<compile_context>
chip_gen: v7x
topology: tpu7x:2x2x1
jax: 0.10.0
libtpu: 0.0.40
codegen_flags: <defaults>
</compile_context>

<pallas_src>
import functools

import jax
import jax.numpy as jnp
from jax.experimental import pallas as pl
from jax.experimental.pallas import tpu as pltpu


def _round_up(x, m):
    return ((x + m - 1) // m) * m


def mf_kernel(uf_ref, it_ref, bias_ref, out_ref):
    """One batch tile, batch on the 128-wide lane axis.

    uf_ref / it_ref : (E, TB)  gathered user / item features (f32 or bf16)
    bias_ref        : (1, TB)  user_bias[u] + item_bias[i] + global_bias (f32)
    out_ref         : (1, TB)  predictions (lane-dense row, f32)
    """
    uf = uf_ref[...].astype(jnp.float32)          # no-op for f32 features
    it = it_ref[...].astype(jnp.float32)
    out_ref[...] = jnp.sum(uf * it, axis=0, keepdims=True) + bias_ref[...]


def _auto_tile(E, feat_bytes, Bp128, vmem_bytes):
    """Pick the largest lane-multiple batch tile such that the double-buffered
    feature streams (2 inputs x 2 buffers) stay under ~1/4 of physical VMEM,
    capped at 32768, and keep >= 4 grid steps when the batch allows it."""
    budget = vmem_bytes // 4
    tb = budget // (4 * E * feat_bytes)
    tb = max(128, min(32768, (tb // 128) * 128))
    if Bp128 >= 4 * 128:                           # megacore sharding + pipelining
        tb = min(tb, max(128, (Bp128 // 4) // 128 * 128))
    return min(tb, Bp128)


def mf_forward(user_emb, item_emb, user_bias, item_bias, global_bias,
               user_id, item_id, *, tb=None, feature_dtype=jnp.float32):
    """Pallas implementation of MF.forward.

    user_emb:    (U, E) f32       item_emb:  (I, E) f32
    user_bias:   (U,)   f32       item_bias: (I,)   f32
    global_bias: (1,)   f32
    user_id / item_id: (B,) int
    returns:     (B,)   f32
    """
    B = user_id.shape[0]
    E = user_emb.shape[1]
    feat_bytes = jnp.dtype(feature_dtype).itemsize

    try:
        vmem_bytes = int(pltpu.get_tpu_info().vmem_capacity_bytes)
    except Exception:            # non-TPU backend / API drift: conservative default
        vmem_bytes = 64 << 20

    Bp128 = _round_up(B, 128)
    if tb is None:
        tb = _auto_tile(E, feat_bytes, Bp128, vmem_bytes)
    # Fail loudly on invalid user-provided tiles before any capping.
    assert tb % 128 == 0, "batch tile must be a multiple of the 128-lane width"
    tb = min(tb, Bp128)                            # never exceed padded batch
    Bp = _round_up(B, tb)
    pad = Bp - B

    uid = jnp.pad(user_id.astype(jnp.int32), (0, pad))    # pad with valid id 0
    iid = jnp.pad(item_id.astype(jnp.int32), (0, pad))

    # XLA glue: embedding row gathers; optional bf16 cast fuses into the gather;
    # emitted transposed so batch lands on the lane axis (XLU-cheap layout for
    # the kernel's sublane reduce and lane-dense store).
    ufT = jnp.take(user_emb, uid, axis=0).astype(feature_dtype).T   # (E, Bp)
    itT = jnp.take(item_emb, iid, axis=0).astype(feature_dtype).T   # (E, Bp)
    bias = (jnp.take(user_bias, uid, axis=0)
            + jnp.take(item_bias, iid, axis=0)
            + global_bias[0]).astype(jnp.float32)[None, :]          # (1, Bp)

    grid = (Bp // tb,)

    # Scoped-VMEM budget: 2 feature inputs x 2 pipeline buffers + small
    # bias/out streams + ~2 MiB internal-scratch headroom.
    need = (2 * 2 * E * tb * feat_bytes) + (2 * 2 * tb * 4) + (2 << 20)
    vmem_limit = int(min(max(32 << 20, 2 * need), int(0.9 * vmem_bytes)))

    flops = 2 * Bp * E
    bytes_accessed = 2 * Bp * E * feat_bytes + 2 * Bp * 4   # features + bias + out

    out = pl.pallas_call(
        mf_kernel,
        out_shape=jax.ShapeDtypeStruct((1, Bp), jnp.float32),
        grid_spec=pltpu.PrefetchScalarGridSpec(
            num_scalar_prefetch=0,
            grid=grid,
            in_specs=[
                pl.BlockSpec((E, tb), lambda i: (0, i)),   # user features (E, TB)
                pl.BlockSpec((E, tb), lambda i: (0, i)),   # item features (E, TB)
                pl.BlockSpec((1, tb), lambda i: (0, i)),   # folded biases  (1, TB)
            ],
            out_specs=pl.BlockSpec((1, tb), lambda i: (0, i)),
        ),
        compiler_params=pltpu.CompilerParams(
            dimension_semantics=("parallel",),
            vmem_limit_bytes=vmem_limit),
        cost_estimate=pl.CostEstimate(
            flops=flops, transcendentals=0, bytes_accessed=bytes_accessed),
    )(ufT, itT, bias)

    return out[0, :B]


if __name__ == "__main__":
    # Small, deterministic synthetic setup (mirrors MF.__init__ shapes).
    user_num, item_num, embedding_size = 64, 128, 32
    batch = 16

    key = jax.random.PRNGKey(0)
    k1, k2, k3, k4, k5, k6, k7 = jax.random.split(key, 7)
    user_embedding = jax.random.normal(k1, (user_num, embedding_size), jnp.float32)
    item_embedding = jax.random.normal(k2, (item_num, embedding_size), jnp.float32)
    user_bias = jax.random.normal(k3, (user_num,), jnp.float32)
    item_bias = jax.random.normal(k4, (item_num,), jnp.float32)
    global_bias = jax.random.normal(k5, (1,), jnp.float32)

    user_id = jax.random.randint(k6, (batch,), 0, user_num, jnp.int32)
    item_id = jax.random.randint(k7, (batch,), 0, item_num, jnp.int32)

    # Pure-JAX reference for correctness.
    uf = user_embedding[user_id]
    itf = item_embedding[item_id]
    ref = (jnp.sum(uf * itf, axis=1)
           + user_bias[user_id] + item_bias[item_id] + global_bias[0])

    # Default f32 feature stream (exact semantics of the PyTorch module).
    fwd = jax.jit(functools.partial(mf_forward))
    pred = jax.block_until_ready(
        fwd(user_embedding, item_embedding, user_bias, item_bias,
            global_bias, user_id, item_id))
    assert pred.shape == (batch,)
    assert jnp.allclose(pred, ref, atol=1e-5, rtol=1e-5), (pred, ref)

    # Optional bf16 feature stream (halves dominant HBM bytes; looser tolerance).
    fwd_bf16 = jax.jit(functools.partial(mf_forward, feature_dtype=jnp.bfloat16))
    pred_bf16 = jax.block_until_ready(
        fwd_bf16(user_embedding, item_embedding, user_bias, item_bias,
                 global_bias, user_id, item_id))
    assert pred_bf16.shape == (batch,)
    assert jnp.allclose(pred_bf16, ref, atol=5e-1, rtol=5e-2), (pred_bf16, ref)

    print("KERNEL_OK")
</pallas_src>

<mosaic_0001>
module attributes {stable_mosaic.version = 11 : i64} {
  func.func @mf_kernel(%arg0: i32, %arg1: memref<32x128xf32, #tpu.memory_space<vmem>>, %arg2: memref<32x128xf32, #tpu.memory_space<vmem>>, %arg3: memref<1x128xf32, #tpu.memory_space<vmem>>, %arg4: memref<1x128xf32, #tpu.memory_space<vmem>>) attributes {dimension_semantics = [#tpu.dimension_semantics<parallel>], iteration_bounds = array<i64: 1>, scalar_prefetch = 0 : i64, scratch_operands = 0 : i64, tpu.core_type = #tpu.core_type<tc>, window_params = [{transform_indices = @transform_0, window_bounds = array<i64: 32, 128>}, {transform_indices = @transform_1, window_bounds = array<i64: 32, 128>}, {transform_indices = @transform_2, window_bounds = array<i64: 1, 128>}, {transform_indices = @transform_3, window_bounds = array<i64: 1, 128>}]} {
    %c0 = arith.constant 0 : index
    %c0_0 = arith.constant 0 : index
    %0 = vector.load %arg1[%c0, %c0_0] : memref<32x128xf32, #tpu.memory_space<vmem>>, vector<32x128xf32>
    %c0_1 = arith.constant 0 : index
    %c0_2 = arith.constant 0 : index
    %1 = vector.load %arg2[%c0_1, %c0_2] : memref<32x128xf32, #tpu.memory_space<vmem>>, vector<32x128xf32>
    %2 = arith.mulf %0, %1 : vector<32x128xf32>
    %cst = arith.constant dense<0.000000e+00> : vector<128xf32>
    %3 = vector.multi_reduction <add>, %2, %cst [0] : vector<32x128xf32> to vector<128xf32>
    %4 = vector.shape_cast %3 : vector<128xf32> to vector<1x128xf32>
    %c0_3 = arith.constant 0 : index
    %c0_4 = arith.constant 0 : index
    %5 = vector.load %arg3[%c0_3, %c0_4] : memref<1x128xf32, #tpu.memory_space<vmem>>, vector<1x128xf32>
    %6 = arith.addf %4, %5 : vector<1x128xf32>
    %c0_5 = arith.constant 0 : index
    %c0_6 = arith.constant 0 : index
    %7 = vector.load %arg4[%c0_5, %c0_6] : memref<1x128xf32, #tpu.memory_space<vmem>>, vector<1x128xf32>
    tpu.vector_store %arg4[%c0_5, %c0_6], %6 {strides = array<i32>} : memref<1x128xf32, #tpu.memory_space<vmem>>, vector<1x128xf32>,
    return
  }
  func.func @transform_0(%arg0: i32) -> (i32, i32) {
    %c0_i32 = arith.constant 0 : i32
    %c0_i32_0 = arith.constant 0 : i32
    return %c0_i32, %arg0 : i32, i32
  }
  func.func @transform_1(%arg0: i32) -> (i32, i32) {
    %c0_i32 = arith.constant 0 : i32
    %c0_i32_0 = arith.constant 0 : i32
    return %c0_i32, %arg0 : i32, i32
  }
  func.func @transform_2(%arg0: i32) -> (i32, i32) {
    %c0_i32 = arith.constant 0 : i32
    %c0_i32_0 = arith.constant 0 : i32
    return %c0_i32, %arg0 : i32, i32
  }
  func.func @transform_3(%arg0: i32) -> (i32, i32) {
    %c0_i32 = arith.constant 0 : i32
    %c0_i32_0 = arith.constant 0 : i32
    return %c0_i32, %arg0 : i32, i32
  }
}

</mosaic_0001>

<bundles_post_ra>
// kernel: mf_forward.1
= control target key start
LH: loop header
LB: loop body
LE: loop exit
PB: predicated region body
PF: predicated region fallthrough
CT: control target
= control target key end

     0   :  { %s92_s0 = inlined_call_operand.vmem [shape: f32[32,128], index: 0, kind: input, shape index: {}]   ;;  %s93_s1 = inlined_call_operand.vmem [shape: f32[32,128], index: 1, kind: input, shape index: {}]   ;;  %s94_s2 = inlined_call_operand.vmem [shape: f32[1,128], index: 2, kind: input, shape index: {}]   ;;  %s95_s3 = inlined_call_operand.vmem [shape: f32[1,128], index: 3, kind: output, shape index: {}]  }
   0x1   :  { %v14_v0 = vld [vmem:[%s92_s0] sm:$0xff]  ;;  %v15_v1 = vld [vmem:[%s92_s0 + $0x8] sm:$0xff]  ;;  %v16_v2 = vld [vmem:[%s92_s0 + $0x10] sm:$0xff] }
   0x2   :  { %v17_v3 = vld [vmem:[%s92_s0 + $0x18] sm:$0xff]  ;;  %v18_v4 = vld [vmem:[%s93_s1] sm:$0xff]  ;;  %v19_v5 = vld [vmem:[%s93_s1 + $0x8] sm:$0xff] }
   0x3   :  { %v20_v6 = vld [vmem:[%s93_s1 + $0x10] sm:$0xff]  ;;  %v21_v7 = vld [vmem:[%s93_s1 + $0x18] sm:$0xff]  ;;  %v22_v8 = vmul.f32 %v18_v4, %v14_v0  ;;  %v23_v9 = vmul.f32 %v19_v5, %v15_v1  ;;  %v35_v20 = vld [vmem:[%s94_s2] sm:$0x1] }
   0x4   :  { %v24_v10 = vmul.f32 %v20_v6, %v16_v2  ;;  %v25_v11 = vmul.f32 %v21_v7, %v17_v3 }
   0x5   :  { %v26_v12 = vadd.f32 %v23_v9, %v22_v8 }
   0x7   :  { %v27_v13 = vadd.f32 %v26_v12, %v24_v10 }
   0x9   :  { %v28_v14 = vadd.f32 %v27_v13, %v25_v11 }
   0xb   :  { %v29_v15 = vrot.slane %v28_v14, 4 }
   0xd   :  { %v30_v16 = vadd.f32 %v29_v15, %v28_v14 }
   0xf   :  { %v31_v17 = vrot.slane %v30_v16, 2 }
  0x11   :  { %v32_v18 = vadd.f32 %v31_v17, %v30_v16 }
  0x13   :  { %v33_v19 = vrot.slane %v32_v18, 1 }
  0x15   :  { %v34_v21 = vadd.f32 %v33_v19, %v32_v18 }
  0x17   :  { %v36_v22 = vadd.f32 %v35_v20, %v34_v21 }
  0x19   :  { %37 = vst [vmem:[%s95_s3] sm:$0x1] %v36_v22 }

</bundles_post_ra>
